<compile_context>
chip_gen: v6e
topology: v6e:2x2x1
jax: 0.10.0
libtpu: 0.0.40
codegen_flags: <defaults>
</compile_context>

<pallas_src>
import jax
import jax.numpy as jnp
from jax.experimental import pallas as pl
from jax.experimental.pallas import tpu as pltpu


def _round_up(v, m):
    return ((v + m - 1) // m) * m


def _pointnet_kernel(x_ref, w1_ref, b1_ref, w2_ref, b2_ref, w3_ref, gmax_ref):
    """One (TB, TN) tile of points -> running per-batch channel max in gmax_ref.

    gmax_ref (the output block, constant along the N grid axis) accumulates
    max over points of the *raw* layer-3 matmul h2 @ W3; bias + ReLU + the
    final projection are applied batch-wide in the wrapper.
    """
    n = pl.program_id(1)

    @pl.when(n == 0)
    def _():
        gmax_ref[...] = jnp.full_like(gmax_ref, -jnp.inf)

    x = x_ref[...]                                   # (TB, TN, 3) f32
    TB, TN, _ = x.shape
    M = TB * TN
    xf = x.reshape(M, 3)
    # Channel pad 3 -> 8 so layer 1 runs as one (M,8)x(8,64) MXU pass.
    x8 = jnp.concatenate([xf, jnp.zeros((M, 5), xf.dtype)], axis=-1)

    # ---- layer 1: Linear(3,64) + ReLU (bf16 MXU, f32 accumulate) ----
    h1 = jnp.dot(x8.astype(jnp.bfloat16), w1_ref[...],
                 preferred_element_type=jnp.float32)
    h1 = jnp.maximum(h1 + b1_ref[...], 0.0)          # (M, 64)

    # ---- layer 2: Linear(64,128) + ReLU ----
    h2 = jnp.dot(h1.astype(jnp.bfloat16), w2_ref[...],
                 preferred_element_type=jnp.float32)
    h2 = jnp.maximum(h2 + b2_ref[...], 0.0)          # (M, 128)

    # ---- layer 3 matmul only: bias + ReLU hoisted past the point max ----
    h3 = jnp.dot(h2.astype(jnp.bfloat16), w3_ref[...],
                 preferred_element_type=jnp.float32)  # (M, 256)

    # ---- running max over points (torch.max(x, 1)[0]) ----
    tile_max = jnp.max(h3.reshape(TB, TN, h3.shape[-1]), axis=1,
                       keepdims=True)                # (TB, 1, 256)
    gmax_ref[...] = jnp.maximum(gmax_ref[...], tile_max)


@jax.jit
def pointnet_encoder_xyz(x, params):
    """x: (B, N, 3) float32.  Returns (B, out_channels) float32."""
    w1, b1, w2, b2, w3, b3, w4, b4 = params
    B, N, Cin = x.shape
    assert Cin == 3, "PointNetEncoderXYZ only supports 3 channels"
    feat = w3.shape[1]             # 256
    out_channels = w4.shape[1]     # 1024

    # --- tile selection ---
    # >=2 batch blocks whenever B >= 2 (both v7x TensorCores get work);
    # ~8192 points per grid step amortizes per-step overhead and fills the MXU.
    if B > 8:
        TB = 8
    else:
        TB = max(1, B // 2)
    B_pad = _round_up(B, TB)
    PT_BUDGET = 8192
    tn_target = max(8, _round_up(max(1, PT_BUDGET // TB), 8))
    TN = min(_round_up(N, 8), tn_target)
    N_pad = _round_up(N, TN)

    # Ragged N: pad the point axis by repeating the last valid point ("edge").
    # Duplicated points cannot change the max -> no in-kernel masking needed.
    if N_pad != N:
        x = jnp.pad(x, ((0, 0), (0, N_pad - N), (0, 0)), mode="edge")
    if B_pad != B:
        x = jnp.pad(x, ((0, B_pad - B), (0, 0), (0, 0)))

    # In-kernel weights: bf16, cast once here (never per grid step).  W1 is
    # channel-padded 3 -> 8 so layer 1 is a K=8 MXU pass.  Biases stay f32.
    w1p = jnp.pad(w1, ((0, 8 - w1.shape[0]), (0, 0))).astype(jnp.bfloat16)
    w2b = w2.astype(jnp.bfloat16)
    w3b = w3.astype(jnp.bfloat16)
    b1r = b1.reshape(1, -1)
    b2r = b2.reshape(1, -1)

    const = lambda b, n: (0, 0)    # weights / biases: same block every step

    # VMEM footprint estimate (per grid step) -> request that plus headroom
    # instead of the full physical VMEM (v7x only has 64 MiB per TensorCore).
    M = TB * TN
    act_bytes = M * (4 * 64 + 4 * 128 + 4 * 256        # h1, h2, h3 (f32)
                     + 2 * 8 + 2 * 64 + 2 * 128)       # bf16 copies fed to MXU
    io_bytes = 2 * (TB * TN * 3 * 4) + 2 * (TB * feat * 4)
    w_bytes = 2 * (2 * (8 * 64 + 64 * 128 + 128 * 256) + 4 * (64 + 128))
    vmem_limit = int(min(max(2 * (act_bytes + io_bytes + w_bytes), 8 << 20),
                         48 << 20))

    flops = 2 * B_pad * N_pad * (8 * 64 + 64 * 128 + 128 * 256)
    bytes_accessed = (4 * int(x.size)
                      + 2 * (8 * 64 + 64 * 128 + 128 * 256)
                      + 4 * (64 + 128)
                      + 4 * B_pad * feat)
    cost = pl.CostEstimate(flops=flops, transcendentals=0,
                           bytes_accessed=int(bytes_accessed))

    gmax = pl.pallas_call(
        _pointnet_kernel,
        out_shape=jax.ShapeDtypeStruct((B_pad, 1, feat), jnp.float32),
        grid_spec=pltpu.PrefetchScalarGridSpec(
            num_scalar_prefetch=0,
            grid=(B_pad // TB, N_pad // TN),
            in_specs=[
                pl.BlockSpec((TB, TN, 3), lambda b, n: (b, n, 0)),  # x tiles
                pl.BlockSpec(w1p.shape, const),    # (8, 64)    bf16
                pl.BlockSpec(b1r.shape, const),    # (1, 64)    f32
                pl.BlockSpec(w2b.shape, const),    # (64, 128)  bf16
                pl.BlockSpec(b2r.shape, const),    # (1, 128)   f32
                pl.BlockSpec(w3b.shape, const),    # (128, 256) bf16
            ],
            # Output block index is constant along n -> the output itself is
            # the running-max accumulator, VMEM-resident across the reduction.
            out_specs=pl.BlockSpec((TB, 1, feat), lambda b, n: (b, 0, 0)),
        ),
        compiler_params=pltpu.CompilerParams(
            dimension_semantics=("parallel", "arbitrary"),
            vmem_limit_bytes=vmem_limit),
        cost_estimate=cost,
    )(x, w1p, b1r, w2b, b2r, w3b)

    gmax = gmax[:B, 0, :]                             # (B, 256)
    # Hoisted layer-3 epilogue + final projection as one batch-wide XLA GEMM
    # (in-kernel it would run at M=TB with tiny MXU fill and pin W4 in VMEM).
    g = jnp.maximum(gmax + b3[None, :], 0.0)
    return jnp.dot(g, w4, preferred_element_type=jnp.float32) + b4[None, :]


def init_params(key, in_channels=3, out_channels=1024):
    """Deterministic synthetic parameters matching nn.Linear shapes.

    PyTorch nn.Linear stores weight as (out, in); we store the transposed
    (in, out) so the kernel does x @ W directly.
    """
    block_channel = [64, 128, 256]
    dims = [in_channels] + block_channel + [out_channels]
    params = []
    for i in range(4):
        key, kw, kb = jax.random.split(key, 3)
        fan_in = dims[i]
        bound = 1.0 / jnp.sqrt(fan_in)
        w = jax.random.uniform(kw, (dims[i], dims[i + 1]), jnp.float32,
                               -bound, bound)
        b = jax.random.uniform(kb, (dims[i + 1],), jnp.float32, -bound, bound)
        params += [w, b]
    return tuple(params)


def _reference(x, params):
    """Pure-f32 XLA reference of the PyTorch forward pass."""
    w1, b1, w2, b2, w3, b3, w4, b4 = params
    h = jnp.maximum(x @ w1 + b1, 0.0)
    h = jnp.maximum(h @ w2 + b2, 0.0)
    h = jnp.maximum(h @ w3 + b3, 0.0)
    g = jnp.max(h, axis=1)
    return g @ w4 + b4


if __name__ == "__main__":
    key = jax.random.PRNGKey(0)
    kx1, kx2, kx3, kp = jax.random.split(key, 4)

    params = init_params(kp, in_channels=3, out_channels=1024)

    # bf16 MXU dots -> compare against the f32 reference with loosened tols.
    TOL = dict(atol=2e-2, rtol=2e-2)

    # Case 1: small tile-aligned shape (B=2, N=128).
    x1 = jax.random.normal(kx1, (2, 128, 3), dtype=jnp.float32)
    out1 = jax.block_until_ready(pointnet_encoder_xyz(x1, params))
    assert out1.shape == (2, 1024)
    assert jnp.allclose(out1, _reference(x1, params), **TOL), "case1 mismatch"

    # Case 2: non-tile-aligned N exercises the edge-padding path.
    x2 = jax.random.normal(kx2, (3, 100, 3), dtype=jnp.float32)
    out2 = jax.block_until_ready(pointnet_encoder_xyz(x2, params))
    assert out2.shape == (3, 1024)
    assert jnp.allclose(out2, _reference(x2, params), **TOL), "case2 mismatch"

    # Case 3: multiple batch blocks and multiple N (reduction) steps, plus
    # edge padding -> exercises the -inf init / running-max accumulator.
    x3 = jax.random.normal(kx3, (16, 2000, 3), dtype=jnp.float32)
    out3 = jax.block_until_ready(pointnet_encoder_xyz(x3, params))
    assert out3.shape == (16, 1024)
    assert jnp.allclose(out3, _reference(x3, params), **TOL), "case3 mismatch"

    print("KERNEL_OK")
</pallas_src>

<mosaic_0001>
module attributes {stable_mosaic.version = 11 : i64} {
  func.func @_pointnet_kernel(%arg0: i32, %arg1: i32, %arg2: memref<1x128x3xf32, #tpu.memory_space<vmem>>, %arg3: memref<8x64xbf16, #tpu.memory_space<vmem>>, %arg4: memref<1x64xf32, #tpu.memory_space<vmem>>, %arg5: memref<64x128xbf16, #tpu.memory_space<vmem>>, %arg6: memref<1x128xf32, #tpu.memory_space<vmem>>, %arg7: memref<128x256xbf16, #tpu.memory_space<vmem>>, %arg8: memref<1x1x256xf32, #tpu.memory_space<vmem>>) attributes {dimension_semantics = [#tpu.dimension_semantics<parallel>, #tpu.dimension_semantics<arbitrary>], iteration_bounds = array<i64: 2, 1>, scalar_prefetch = 0 : i64, scratch_operands = 0 : i64, tpu.core_type = #tpu.core_type<tc>, window_params = [{transform_indices = @transform_0, window_bounds = array<i64: 1, 128, 3>}, {pipeline_mode = #tpu.pipeline_mode<synchronous>, transform_indices = @transform_1, window_bounds = array<i64: 8, 64>}, {pipeline_mode = #tpu.pipeline_mode<synchronous>, transform_indices = @transform_2, window_bounds = array<i64: 1, 64>}, {pipeline_mode = #tpu.pipeline_mode<synchronous>, transform_indices = @transform_3, window_bounds = array<i64: 64, 128>}, {pipeline_mode = #tpu.pipeline_mode<synchronous>, transform_indices = @transform_4, window_bounds = array<i64: 1, 128>}, {pipeline_mode = #tpu.pipeline_mode<synchronous>, transform_indices = @transform_5, window_bounds = array<i64: 128, 256>}, {transform_indices = @transform_6, window_bounds = array<i64: 1, 1, 256>}]} {
    %c0_i32 = arith.constant 0 : i32
    %0 = arith.cmpi eq, %arg1, %c0_i32 : i32
    %1 = arith.extui %0 : i1 to i32
    %c0_i32_0 = arith.constant 0 : i32
    %2 = arith.cmpi ne, %1, %c0_i32_0 : i32
    scf.if %2 {
      %cst_25 = arith.constant 0xFF800000 : f32
      %32 = vector.broadcast %cst_25 : f32 to vector<1x1x256xf32>
      %c0_26 = arith.constant 0 : index
      %c0_27 = arith.constant 0 : index
      %c0_28 = arith.constant 0 : index
      %33 = vector.load %arg8[%c0_26, %c0_27, %c0_28] : memref<1x1x256xf32, #tpu.memory_space<vmem>>, vector<1x1x256xf32>
      tpu.vector_store %arg8[%c0_26, %c0_27, %c0_28], %32 {strides = array<i32>} : memref<1x1x256xf32, #tpu.memory_space<vmem>>, vector<1x1x256xf32>,
    } else {
    }
    %c0 = arith.constant 0 : index
    %c0_1 = arith.constant 0 : index
    %c0_2 = arith.constant 0 : index
    %3 = vector.load %arg2[%c0, %c0_1, %c0_2] : memref<1x128x3xf32, #tpu.memory_space<vmem>>, vector<1x128x3xf32>
    %4 = vector.shape_cast %3 : vector<1x128x3xf32> to vector<128x3xf32>
    %cst = arith.constant 0.000000e+00 : f32
    %5 = vector.broadcast %cst : f32 to vector<128x5xf32>
    %6 = tpu.concatenate %4, %5 in 1 : vector<128x3xf32>, vector<128x5xf32> -> vector<128x8xf32>
    %7 = arith.truncf %6 : vector<128x8xf32> to vector<128x8xbf16>
    %c0_3 = arith.constant 0 : index
    %c0_4 = arith.constant 0 : index
    %8 = vector.load %arg3[%c0_3, %c0_4] : memref<8x64xbf16, #tpu.memory_space<vmem>>, vector<8x64xbf16>
    %cst_5 = arith.constant dense<0.000000e+00> : vector<128x64xf32>
    %9 = tpu.matmul %7, %8, %cst_5 {dimension_numbers = #tpu.dot_dimension_numbers<[1], [0], [0], [1], [0, 0, 1, 1], [], []>} : vector<128x8xbf16>, vector<8x64xbf16>, vector<128x64xf32> -> vector<128x64xf32>
    %c0_6 = arith.constant 0 : index
    %c0_7 = arith.constant 0 : index
    %10 = vector.load %arg4[%c0_6, %c0_7] : memref<1x64xf32, #tpu.memory_space<vmem>>, vector<1x64xf32>
    %11 = vector.broadcast %10 : vector<1x64xf32> to vector<128x64xf32>
    %12 = arith.addf %9, %11 : vector<128x64xf32>
    %cst_8 = arith.constant 0.000000e+00 : f32
    %13 = vector.broadcast %cst_8 : f32 to vector<128x64xf32>
    %14 = arith.maximumf %12, %13 : vector<128x64xf32>
    %15 = arith.truncf %14 : vector<128x64xf32> to vector<128x64xbf16>
    %c0_9 = arith.constant 0 : index
    %c0_10 = arith.constant 0 : index
    %16 = vector.load %arg5[%c0_9, %c0_10] : memref<64x128xbf16, #tpu.memory_space<vmem>>, vector<64x128xbf16>
    %cst_11 = arith.constant dense<0.000000e+00> : vector<128x128xf32>
    %17 = tpu.matmul %15, %16, %cst_11 {dimension_numbers = #tpu.dot_dimension_numbers<[1], [0], [0], [1], [0, 0, 1, 1], [], []>} : vector<128x64xbf16>, vector<64x128xbf16>, vector<128x128xf32> -> vector<128x128xf32>
    %c0_12 = arith.constant 0 : index
    %c0_13 = arith.constant 0 : index
    %18 = vector.load %arg6[%c0_12, %c0_13] : memref<1x128xf32, #tpu.memory_space<vmem>>, vector<1x128xf32>
    %19 = vector.broadcast %18 : vector<1x128xf32> to vector<128x128xf32>
    %20 = arith.addf %17, %19 : vector<128x128xf32>
    %cst_14 = arith.constant 0.000000e+00 : f32
    %21 = vector.broadcast %cst_14 : f32 to vector<128x128xf32>
    %22 = arith.maximumf %20, %21 : vector<128x128xf32>
    %23 = arith.truncf %22 : vector<128x128xf32> to vector<128x128xbf16>
    %c0_15 = arith.constant 0 : index
    %c0_16 = arith.constant 0 : index
    %24 = vector.load %arg7[%c0_15, %c0_16] : memref<128x256xbf16, #tpu.memory_space<vmem>>, vector<128x256xbf16>
    %cst_17 = arith.constant dense<0.000000e+00> : vector<128x256xf32>
    %25 = tpu.matmul %23, %24, %cst_17 {dimension_numbers = #tpu.dot_dimension_numbers<[1], [0], [0], [1], [0, 0, 1, 1], [], []>} : vector<128x128xbf16>, vector<128x256xbf16>, vector<128x256xf32> -> vector<128x256xf32>
    %26 = vector.shape_cast %25 : vector<128x256xf32> to vector<1x128x256xf32>
    %cst_18 = arith.constant dense<0xFF800000> : vector<1x256xf32>
    %27 = vector.multi_reduction <maximumf>, %26, %cst_18 [1] : vector<1x128x256xf32> to vector<1x256xf32>
    %28 = vector.shape_cast %27 : vector<1x256xf32> to vector<1x1x256xf32>
    %c0_19 = arith.constant 0 : index
    %c0_20 = arith.constant 0 : index
    %c0_21 = arith.constant 0 : index
    %29 = vector.load %arg8[%c0_19, %c0_20, %c0_21] : memref<1x1x256xf32, #tpu.memory_space<vmem>>, vector<1x1x256xf32>
    %30 = arith.maximumf %29, %28 : vector<1x1x256xf32>
    %c0_22 = arith.constant 0 : index
    %c0_23 = arith.constant 0 : index
    %c0_24 = arith.constant 0 : index
    %31 = vector.load %arg8[%c0_22, %c0_23, %c0_24] : memref<1x1x256xf32, #tpu.memory_space<vmem>>, vector<1x1x256xf32>
    tpu.vector_store %arg8[%c0_22, %c0_23, %c0_24], %30 {strides = array<i32>} : memref<1x1x256xf32, #tpu.memory_space<vmem>>, vector<1x1x256xf32>,
    return
  }
  func.func @transform_0(%arg0: i32, %arg1: i32) -> (i32, i32, i32) {
    %c0_i32 = arith.constant 0 : i32
    %c0_i32_0 = arith.constant 0 : i32
    return %arg0, %arg1, %c0_i32 : i32, i32, i32
  }
  func.func @transform_1(%arg0: i32, %arg1: i32) -> (i32, i32) {
    %c0_i32 = arith.constant 0 : i32
    %c0_i32_0 = arith.constant 0 : i32
    %c0_i32_1 = arith.constant 0 : i32
    return %c0_i32, %c0_i32_0 : i32, i32
  }
  func.func @transform_2(%arg0: i32, %arg1: i32) -> (i32, i32) {
    %c0_i32 = arith.constant 0 : i32
    %c0_i32_0 = arith.constant 0 : i32
    %c0_i32_1 = arith.constant 0 : i32
    return %c0_i32, %c0_i32_0 : i32, i32
  }
  func.func @transform_3(%arg0: i32, %arg1: i32) -> (i32, i32) {
    %c0_i32 = arith.constant 0 : i32
    %c0_i32_0 = arith.constant 0 : i32
    %c0_i32_1 = arith.constant 0 : i32
    return %c0_i32, %c0_i32_0 : i32, i32
  }
  func.func @transform_4(%arg0: i32, %arg1: i32) -> (i32, i32) {
    %c0_i32 = arith.constant 0 : i32
    %c0_i32_0 = arith.constant 0 : i32
    %c0_i32_1 = arith.constant 0 : i32
    return %c0_i32, %c0_i32_0 : i32, i32
  }
  func.func @transform_5(%arg0: i32, %arg1: i32) -> (i32, i32) {
    %c0_i32 = arith.constant 0 : i32
    %c0_i32_0 = arith.constant 0 : i32
    %c0_i32_1 = arith.constant 0 : i32
    return %c0_i32, %c0_i32_0 : i32, i32
  }
  func.func @transform_6(%arg0: i32, %arg1: i32) -> (i32, i32, i32) {
    %c0_i32 = arith.constant 0 : i32
    %c0_i32_0 = arith.constant 0 : i32
    %c0_i32_1 = arith.constant 0 : i32
    return %arg0, %c0_i32, %c0_i32_0 : i32, i32, i32
  }
}

</mosaic_0001>

<bundles_post_ra>
// kernel: pointnet_encoder_xyz.1
= control target key start
LH: loop header
LB: loop body
LE: loop exit
PB: predicated region body
PF: predicated region fallthrough
CT: control target
= control target key end

     0   :  { %s1261_s21 = smov 0   ;;  %s1263_s22 = smov 0   ;;  %s1470_s0 = inlined_call_operand.vmem [shape: f32[2,128,3], index: 0, kind: input, shape index: {}]   ;;  %s1471_s1 = inlined_call_operand.vmem [shape: bf16[8,64], index: 1, kind: input, shape index: {}]   ;;  %s1472_s2 = inlined_call_operand.vmem [shape: f32[1,64], index: 2, kind: input, shape index: {}]   ;;  %s1473_s3 = inlined_call_operand.vmem [shape: bf16[64,128], index: 3, kind: input, shape index: {}]   ;;  %s1474_s4 = inlined_call_operand.vmem [shape: f32[1,128], index: 4, kind: input, shape index: {}]   ;;  %s1475_s5 = inlined_call_operand.vmem [shape: bf16[128,256], index: 5, kind: input, shape index: {}]   ;;  %s1476_s6 = inlined_call_operand.vmem [shape: f32[2,1,256], index: 6, kind: output, shape index: {}]  }
   0x1   :  { %s1265_s23 = smov 0  }
   0x2 LB: > { %s28_s24 = sadd.s32 1, %s1217_s22  ;;  %p1019_p0 = scmp.ge.s32.totalorder %s1221_s23, 1  ;;  %s1221_s23 = sphi %s1265_s23, %s16_s23   ;;  %s1217_s22 = sphi %s1263_s22, %s1480_s22   ;;  %s1213_s21 = sphi %s1261_s21, %s1479_s21  }
   0x3   : > { %p30_p1 = scmp.ge.s32.totalorder %s28_s24, 2  ;;  %p231_p2 = scmp.lt.s32.totalorder %s1221_s23, 3 }
   0x5   : > { %s1482_s24 = smov (%p30_p1, %s28_s24), 0  ;;  %p232_p3 = pnand %p1019_p0, %p231_p2 }
   0x6   : > { %p265_p4 = scmp.lt.s32.totalorder (!%p232_p3), %s1213_s21, 1 }
   0x7   : > { %235 = sbr.rel (%p232_p3) target bundleno = 693 (0x2b5), region = 44 }
   0xc   : > { %v329_v0 = vld [vmem:[%s1471_s1] sm:$0xf]  ;;  %vm362_vm0 = vcmask 1043456   ;;  %v1171_v2 = vld [vmem:[%s1473_s3 + $0x18] sm:$0xff]   ;;  %s1484_s21 = smov (!%p265_p4, %s1213_s21), 1  ;;  %vm304_vm1 = vcmask 23552  }
   0xd   : > { %1143 = vmatprep.subr.msk.bf16.mxu0 %vm362_vm0, %v329_v0  ;;  %v364_v1 = vsel %vm362_vm0, %v329_v0, 0  ;;  %1103 = vmatprep.subr.bf16.mxu1 %v1171_v2  ;;  %s1063_s29 = sshll.u32 %s1484_s21, 7  ;;  %vm337_vm2 = vcmask 64512   ;;  %v1172_v43 = vld [vmem:[%s1473_s3 + $0x10] sm:$0xff]   ;;  %v1173_v44 = vld [vmem:[%s1473_s3 + $0x8] sm:$0xff]   ;;  %v1174_v45 = vld [vmem:[%s1473_s3] sm:$0xff]  }
   0xe   : > { %1086 = vmatpush3.bf16.msra.mxu0 %v364_v1  ;;  %1104 = vmatpush3.bf16.msra.mxu1 %v1171_v2  ;;  %s1291_s8 = scalar_lea.vmem %s1470_s0, %s1063_s29  ;;  %v1175_v46 = vld [vmem:[%s1475_s5 + $0x70] ss:$8 sps:$4 sm:$0xff]   ;;  %v1177_v47 = vld [vmem:[%s1475_s5 + $0x74] ss:$8 sps:$4 sm:$0xff]   ;;  %v1180_v48 = vld [vmem:[%s1475_s5 + $0x64] ss:$8 sps:$4 sm:$0xff]  }
   0xf   : > { %v288_v3 = vld [vmem:[%s1291_s8] sm:$0xff]  ;;  %v289_v4 = vld [vmem:[%s1291_s8 + $0x8] sm:$0xff]  ;;  %v290_v5 = vld [vmem:[%s1291_s8 + $0x10] sm:$0xff]  ;;  %1105 = vmatprep.subr.bf16.mxu1 %v1172_v43  ;;  %768 = vmatprep.subr.bf16.mxu0 %v1177_v47  ;;  %vm526_vm3 = vcmask 523264   ;;  %s1022_s11 = sshll.u32 %s1484_s21, 1 }
  0x10   : > { %v305_v6 = vsel %vm304_vm1, %v288_v3, 0.0  ;;  %v306_v7 = vsel %vm304_vm1, %v289_v4, 0.0  ;;  %v291_v8 = vld [vmem:[%s1291_s8 + $0x18] sm:$0xff]  ;;  %v307_v9 = vsel %vm304_vm1, %v290_v5, 0.0  ;;  %v292_v10 = vld [vmem:[%s1291_s8 + $0x20] sm:$0xff]  ;;  %v293_v11 = vld [vmem:[%s1291_s8 + $0x28] sm:$0xff]  ;;  %s1446_s14 = scalar_lea.vmem %s1476_s6, %s1022_s11 }
  0x11   : > { %v321_v12 = vpack.c.bf16 %v306_v7, %v305_v6  ;;  %v308_v13 = vsel %vm304_vm1, %v291_v8, 0.0  ;;  %v309_v14 = vsel %vm304_vm1, %v292_v10, 0.0  ;;  %v310_v15 = vsel %vm304_vm1, %v293_v11, 0.0  ;;  %v294_v18 = vld [vmem:[%s1291_s8 + $0x30] sm:$0xff]  ;;  %v295_v19 = vld [vmem:[%s1291_s8 + $0x38] sm:$0xff]  ;;  %v296_v20 = vld [vmem:[%s1291_s8 + $0x40] sm:$0xff] }
  0x12   : > { %v322_v16 = vpack.c.bf16 %v308_v13, %v307_v9  ;;  %v323_v17 = vpack.c.bf16 %v310_v15, %v309_v14  ;;  %v297_v21 = vld [vmem:[%s1291_s8 + $0x48] sm:$0xff]  ;;  %v311_v22 = vsel %vm304_vm1, %v294_v18, 0.0  ;;  %v312_v23 = vsel %vm304_vm1, %v295_v19, 0.0  ;;  %v298_v28 = vld [vmem:[%s1291_s8 + $0x50] sm:$0xff]  ;;  %v299_v29 = vld [vmem:[%s1291_s8 + $0x58] sm:$0xff]  ;;  %1106 = vmatpush3.bf16.msra.mxu1 %v1172_v43 }
  0x13   : > { %1087 = vmatprep.mubr.msk.bf16.mxu0 %vm337_vm2, %v321_v12  ;;  %v313_v24 = vsel %vm304_vm1, %v296_v20, 0.0  ;;  %v314_v25 = vsel %vm304_vm1, %v297_v21, 0.0  ;;  %v324_v26 = vpack.c.bf16 %v312_v23, %v311_v22  ;;  %v300_v30 = vld [vmem:[%s1291_s8 + $0x60] sm:$0xff]  ;;  %v301_v31 = vld [vmem:[%s1291_s8 + $0x68] sm:$0xff]  ;;  %v315_v32 = vsel %vm304_vm1, %v298_v28, 0.0  ;;  %v302_v38 = vld [vmem:[%s1291_s8 + $0x70] sm:$0xff]  ;;  %1107 = vmatprep.subr.bf16.mxu1 %v1173_v44 }
  0x14   : > { %1088 = vmatmul.mubr.msk.bf16.vlgmr.msra.gmra.mxu0 %vm337_vm2, %v322_v16  ;;  %v325_v27 = vpack.c.bf16 %v314_v25, %v313_v24  ;;  %v316_v33 = vsel %vm304_vm1, %v299_v29, 0.0  ;;  %v317_v34 = vsel %vm304_vm1, %v300_v30, 0.0  ;;  %v318_v35 = vsel %vm304_vm1, %v301_v31, 0.0  ;;  %v303_v39 = vld [vmem:[%s1291_s8 + $0x78] sm:$0xff]  ;;  %v1178_v49 = vld [vmem:[%s1475_s5 + $0x60] ss:$8 sps:$4 sm:$0xff]  }
  0x15   : > { %1091 = vmatprep.mubr.msk.bf16.mxu0 %vm337_vm2, %v323_v17  ;;  %v326_v36 = vpack.c.bf16 %v316_v33, %v315_v32  ;;  %v327_v37 = vpack.c.bf16 %v318_v35, %v317_v34  ;;  %v319_v40 = vsel %vm304_vm1, %v302_v38, 0.0  ;;  %v320_v41 = vsel %vm304_vm1, %v303_v39, 0.0  ;;  %769 = vmatpush1.bf16.msra.mxu0 %v1175_v46  ;;  %v1183_v50 = vld [vmem:[%s1475_s5 + $0x54] ss:$8 sps:$4 sm:$0xff]   ;;  %v1181_v51 = vld [vmem:[%s1475_s5 + $0x50] ss:$8 sps:$4 sm:$0xff]  }
  0x16   : > { %v328_v42 = vpack.c.bf16 %v320_v41, %v319_v40  ;;  %1108 = vmatpush3.bf16.msra.mxu1 %v1173_v44  ;;  %770 = vmatprep.subr.bf16.mxu0 %v1180_v48  ;;  %v1186_v52 = vld [vmem:[%s1475_s5 + $0x44] ss:$8 sps:$4 sm:$0xff]   ;;  %v1366_v53 = vld [vmem:[%s1475_s5 + $0x40] ss:$8 sps:$4 sm:$0xff]   ;;  %v1371_v54 = vld [vmem:[%s1475_s5 + $0x34] ss:$8 sps:$4 sm:$0xff]  }
  0x17   : > { %1109 = vmatprep.subr.bf16.mxu1 %v1174_v45  ;;  %v1377_v55 = vld [vmem:[%s1475_s5 + $0x30] ss:$8 sps:$4 sm:$0xff]   ;;  %v1384_v58 = vld [vmem:[%s1472_s2] ss:$0 sm:$0xff] }
  0x19   : > { %771 = vmatpush1.bf16.msra.mxu0 %v1178_v49 }
  0x1a   : > { %1110 = vmatpush3.bf16.msra.mxu1 %v1174_v45  ;;  %772 = vmatprep.subr.bf16.mxu0 %v1183_v50 }
  0x1b   : > { %1127 = vmatprep.subr.bf16.mxu1 %v1177_v47 }
  0x1c   : > { %1092 = vmatmul.mubr.msk.bf16.gmra.mxu0 %vm337_vm2, %v324_v26 }
  0x1d   : > { %1095 = vmatprep.mubr.msk.bf16.mxu0 %vm337_vm2, %v325_v27  ;;  %773 = vmatpush1.bf16.msra.mxu0 %v1181_v51 }
  0x1e   : > { %774 = vmatprep.subr.bf16.mxu0 %v1186_v52 }
  0x21   : > { %775 = vmatpush1.bf16.msra.mxu0 %v1366_v53 }
  0x22   : > { %776 = vmatprep.subr.bf16.mxu0 %v1371_v54 }
  0x24   : > { %1096 = vmatmul.mubr.msk.bf16.gmra.mxu0 %vm337_vm2, %v326_v36 }
  0x25   : > { %1099 = vmatprep.mubr.msk.bf16.mxu0 %vm337_vm2, %v327_v37  ;;  %777 = vmatpush1.bf16.msra.mxu0 %v1377_v55 }
  0x2c   : > { %1100 = vmatmul.mubr.msk.bf16.gmra.mxu0 %vm337_vm2, %v328_v42 }
  0xd4   : > { %v1089_v56 = vpop.f32.mrf.mxu0 }
  0xd5   : > { %v409_v62 = vadd.f32 %v1089_v56, %v1384_v58 }
  0xd6   : > { %v400_v57 = vpop.f32.mrf.mxu0 }
  0xd7   : > { %v401_v60 = vadd.f32 %v1384_v58, %v400_v57  ;;  %v465_v5 = vmax.f32 %v409_v62, 0.0 }
  0xd8   : > { %v1090_v59 = vpop.f32.mrf.mxu0 }
  0xd9   : > { %v412_v61 = vadd.f32 %v1090_v59, %v1384_v58  ;;  %v463_v3 = vmax.f32 %v401_v60, 0.0 }
  0xda   : > { %v403_v63 = vpop.f32.mrf.mxu0 }
  0xdb   : > { %v404_v0 = vadd.f32 %v1384_v58, %v403_v63  ;;  %v466_v1 = vmax.f32 %v412_v61, 0.0 }
  0xdc   : > { %v1093_v2 = vpop.f32.mrf.mxu0 }
  0xdd   : > { %v464_v4 = vmax.f32 %v404_v0, 0.0  ;;  %v425_v6 = vadd.f32 %v1093_v2, %v1384_v58  ;;  %v480_v10 = vpack.c.bf16 %v466_v1, %v465_v5 }
  0xde   : > { %v416_v7 = vpop.f32.mrf.mxu0 }
  0xdf   : > { %v417_v8 = vadd.f32 %v1384_v58, %v416_v7  ;;  %v479_v9 = vpack.c.bf16 %v464_v4, %v463_v3  ;;  %v469_v13 = vmax.f32 %v425_v6, 0.0 }
  0xe0   : > { %v1094_v11 = vpop.f32.mrf.mxu0 }
  0xe1   : > { %v428_v12 = vadd.f32 %v1094_v11, %v1384_v58  ;;  %1111 = vmatprep.mubr.msk.bf16.mxu1 %vm526_vm3, %v479_v9  ;;  %v467_v15 = vmax.f32 %v417_v8, 0.0 }
  0xe2   : > { %v419_v14 = vpop.f32.mrf.mxu0  ;;  %1112 = vmatmul.mubr.msk.bf16.vlgmr.msra.gmra.mxu1 %vm526_vm3, %v480_v10 }
  0xe3   : > { %v470_v16 = vmax.f32 %v428_v12, 0.0  ;;  %v420_v17 = vadd.f32 %v1384_v58, %v419_v14  ;;  %1135 = vmatpush1.bf16.msra.mxu1 %v1175_v46 }
  0xe4   : > { %v1097_v18 = vpop.f32.mrf.mxu0  ;;  %1128 = vmatprep.subr.bf16.mxu1 %v1180_v48 }
  0xe5   : > { %v468_v19 = vmax.f32 %v420_v17, 0.0  ;;  %v482_v20 = vpack.c.bf16 %v470_v16, %v469_v13  ;;  %v441_v21 = vadd.f32 %v1097_v18, %v1384_v58 }
  0xe6   : > { %v432_v22 = vpop.f32.mrf.mxu0 }
  0xe7   : > { %v481_v23 = vpack.c.bf16 %v468_v19, %v467_v15  ;;  %v433_v24 = vadd.f32 %v1384_v58, %v432_v22  ;;  %1136 = vmatpush1.bf16.msra.mxu1 %v1178_v49  ;;  %v473_v27 = vmax.f32 %v441_v21, 0.0  ;;  %v1192_v49 = vld [vmem:[%s1475_s5 + $0x24] ss:$8 sps:$4 sm:$0xff]  }
  0xe8   : > { %v1098_v25 = vpop.f32.mrf.mxu0  ;;  %1129 = vmatprep.subr.bf16.mxu1 %v1183_v50  ;;  %v1190_v50 = vld [vmem:[%s1475_s5 + $0x20] ss:$8 sps:$4 sm:$0xff]   ;;  %778 = vmatprep.subr.bf16.mxu0 %v1192_v49 }
  0xe9   : > { %v444_v26 = vadd.f32 %v1098_v25, %v1384_v58  ;;  %1115 = vmatprep.mubr.msk.bf16.mxu1 %vm526_vm3, %v481_v23  ;;  %v471_v29 = vmax.f32 %v433_v24, 0.0  ;;  %779 = vmatpush1.bf16.msra.mxu0 %v1190_v50 }
  0xea   : > { %v435_v28 = vpop.f32.mrf.mxu0  ;;  %1116 = vmatmul.mubr.msk.bf16.gmra.mxu1 %vm526_vm3, %v482_v20 }
  0xeb   : > { %v474_v30 = vmax.f32 %v444_v26, 0.0  ;;  %v436_v31 = vadd.f32 %v1384_v58, %v435_v28  ;;  %1137 = vmatpush1.bf16.msra.mxu1 %v1181_v51  ;;  %v1195_v51 = vld [vmem:[%s1475_s5 + $0x14] ss:$8 sps:$4 sm:$0xff]  }
  0xec   : > { %v1101_v32 = vpop.f32.mrf.mxu0  ;;  %1130 = vmatprep.subr.bf16.mxu1 %v1186_v52  ;;  %v1193_v52 = vld [vmem:[%s1475_s5 + $0x10] ss:$8 sps:$4 sm:$0xff]   ;;  %780 = vmatprep.subr.bf16.mxu0 %v1195_v51 }
  0xed   : > { %v472_v33 = vmax.f32 %v436_v31, 0.0  ;;  %v484_v34 = vpack.c.bf16 %v474_v30, %v473_v27  ;;  %v457_v35 = vadd.f32 %v1101_v32, %v1384_v58  ;;  %781 = vmatpush1.bf16.msra.mxu0 %v1193_v52 }
  0xee   : > { %v448_v36 = vpop.f32.mrf.mxu0 }
  0xef   : > { %v483_v37 = vpack.c.bf16 %v472_v33, %v471_v29  ;;  %v449_v38 = vadd.f32 %v1384_v58, %v448_v36  ;;  %1138 = vmatpush1.bf16.msra.mxu1 %v1366_v53  ;;  %v477_v41 = vmax.f32 %v457_v35, 0.0  ;;  %v1198_v53 = vld [vmem:[%s1475_s5 + $0x4] ss:$8 sps:$4 sm:$0xff]  }
  0xf0   : > { %v1102_v39 = vpop.f32.mrf.mxu0  ;;  %1131 = vmatprep.subr.bf16.mxu1 %v1371_v54  ;;  %v1196_v54 = vld [vmem:[%s1475_s5] ss:$8 sps:$4 sm:$0xff]   ;;  %782 = vmatprep.subr.bf16.mxu0 %v1198_v53 }
  0xf1   : > { %v460_v40 = vadd.f32 %v1102_v39, %v1384_v58  ;;  %1119 = vmatprep.mubr.msk.bf16.mxu1 %vm526_vm3, %v483_v37  ;;  %v475_v43 = vmax.f32 %v449_v38, 0.0  ;;  %783 = vmatpush1.bf16.msra.mxu0 %v1196_v54 }
  0xf2   : > { %v451_v42 = vpop.f32.mrf.mxu0  ;;  %1120 = vmatmul.mubr.msk.bf16.gmra.mxu1 %vm526_vm3, %v484_v34 }
  0xf3   : > { %v478_v44 = vmax.f32 %v460_v40, 0.0  ;;  %v452_v45 = vadd.f32 %v1384_v58, %v451_v42  ;;  %1139 = vmatpush1.bf16.msra.mxu1 %v1377_v55  ;;  %v1223_v55 = vmov 0   ;;  %v1032_v58 = vld [vmem:[%s1474_s4] ss:$0 sm:$0xff] }
  0xf4   : > { %1132 = vmatprep.subr.bf16.mxu1 %v1192_v49  ;;  %800 = vmatprep.mubr.bf16.mxu0 %v1223_v55  ;;  %v283_v49 = vlaneseq }
  0xf5   : > { %v476_v46 = vmax.f32 %v452_v45, 0.0  ;;  %v486_v47 = vpack.c.bf16 %v478_v44, %v477_v41 }
  0xf6   : > { %vm1449_vm4 = vcmp.lt.s32.totalorder %v283_v49, 256 }
  0xf7   : > { %v485_v48 = vpack.c.bf16 %v476_v46, %v475_v43  ;;  %1140 = vmatpush1.bf16.msra.mxu1 %v1190_v50 }
  0xf8   : > { %1133 = vmatprep.subr.bf16.mxu1 %v1195_v51  ;;  %v1224_v51 = vmov -inf  }
  0xf9   : > { %1123 = vmatprep.mubr.msk.bf16.mxu1 %vm526_vm3, %v485_v48  ;;  %287 = vst.msk [vmem:[%s1446_s14] sm:$0x3] %vm1449_vm4, %v1224_v51 }
  0xfa   : > { %1124 = vmatmul.mubr.msk.bf16.gmra.mxu1 %vm526_vm3, %v486_v47 }
  0xfb   : > { %1141 = vmatpush1.bf16.msra.mxu1 %v1193_v52  ;;  %850 = vmatprep.mubr.bf16.mxu1 %v1223_v55 }
  0xfc   : > { %1134 = vmatprep.subr.bf16.mxu1 %v1198_v53 }
  0xff   : > { %1142 = vmatpush1.bf16.msra.mxu1 %v1196_v54 }
 0x1a2   : > { %v1113_v56 = vpop.f32.mrf.mxu1 }
 0x1a3   : > { %v594_v6 = vadd.f32 %v1113_v56, %v1032_v58 }
 0x1a4   : > { %v585_v57 = vpop.f32.mrf.mxu1 }
 0x1a5   : > { %v586_v60 = vadd.f32 %v1032_v58, %v585_v57  ;;  %v650_v10 = vmax.f32 %v594_v6, 0.0 }
 0x1a6   : > { %v1114_v59 = vpop.f32.mrf.mxu1 }
 0x1a7   : > { %v648_v0 = vmax.f32 %v586_v60, 0.0  ;;  %v597_v3 = vadd.f32 %v1114_v59, %v1032_v58 }
 0x1a8   : > { %v588_v61 = vpop.f32.mrf.mxu1 }
 0x1a9   : > { %v589_v62 = vadd.f32 %v1032_v58, %v588_v61  ;;  %v651_v8 = vmax.f32 %v597_v3, 0.0 }
 0x1aa   : > { %v1117_v63 = vpop.f32.mrf.mxu1 }
 0x1ab   : > { %v649_v1 = vmax.f32 %v589_v62, 0.0  ;;  %v665_v12 = vpack.c.bf16 %v651_v8, %v650_v10  ;;  %v610_v29 = vadd.f32 %v1117_v63, %v1032_v58 }
 0x1ac   : > { %v601_v2 = vpop.f32.mrf.mxu1 }
 0x1ad   : > { %v664_v4 = vpack.c.bf16 %v649_v1, %v648_v0  ;;  %v602_v16 = vadd.f32 %v1032_v58, %v601_v2  ;;  %v654_v34 = vmax.f32 %v610_v29, 0.0 }
 0x1ae   : > { %v1118_v5 = vpop.f32.mrf.mxu1 }
 0x1af   : > { %801 = vmatmul.mubr.bf16.vlgmr.msra.gmra.mxu0 %v664_v4  ;;  %v652_v23 = vmax.f32 %v602_v16, 0.0  ;;  %v613_v26 = vadd.f32 %v1118_v5, %v1032_v58 }
 0x1b0   : > { %v604_v7 = vpop.f32.mrf.mxu1  ;;  %810 = vmatprep.mubr.bf16.mxu0 %v1223_v55 }
 0x1b1   : > { %v605_v13 = vadd.f32 %v1032_v58, %v604_v7  ;;  %v655_v32 = vmax.f32 %v613_v26, 0.0 }
 0x1b2   : > { %v1121_v9 = vpop.f32.mrf.mxu1 }
 0x1b3   : > { %v626_v14 = vadd.f32 %v1121_v9, %v1032_v58  ;;  %v653_v19 = vmax.f32 %v605_v13, 0.0  ;;  %v667_v37 = vpack.c.bf16 %v655_v32, %v654_v34 }
 0x1b4   : > { %v617_v11 = vpop.f32.mrf.mxu1 }
 0x1b5   : > { %v658_v20 = vmax.f32 %v626_v14, 0.0  ;;  %v666_v27 = vpack.c.bf16 %v653_v19, %v652_v23  ;;  %v618_v41 = vadd.f32 %v1032_v58, %v617_v11 }
 0x1b6   : > { %v1122_v15 = vpop.f32.mrf.mxu1 }
 0x1b7   : > { %v629_v17 = vadd.f32 %v1122_v15, %v1032_v58  ;;  %811 = vmatmul.mubr.bf16.gmra.mxu0 %v665_v12  ;;  %v656_v45 = vmax.f32 %v618_v41, 0.0 }
 0x1b8   : > { %v620_v18 = vpop.f32.mrf.mxu1  ;;  %820 = vmatprep.mubr.bf16.mxu0 %v1223_v55 }
 0x1b9   : > { %v659_v21 = vmax.f32 %v629_v17, 0.0  ;;  %v621_v38 = vadd.f32 %v1032_v58, %v620_v18 }
 0x1ba   : > { %v1125_v22 = vpop.f32.mrf.mxu1 }
 0x1bb   : > { %v669_v24 = vpack.c.bf16 %v659_v21, %v658_v20  ;;  %v642_v42 = vadd.f32 %v1125_v22, %v1032_v58  ;;  %v657_v43 = vmax.f32 %v621_v38, 0.0 }
 0x1bc   : > { %v633_v25 = vpop.f32.mrf.mxu1 }
 0x1bd   : > { %851 = vmatmul.mubr.bf16.vlgmr.msra.gmra.mxu1 %v669_v24  ;;  %v634_v30 = vadd.f32 %v1032_v58, %v633_v25  ;;  %v662_v46 = vmax.f32 %v642_v42, 0.0  ;;  %v668_v47 = vpack.c.bf16 %v657_v43, %v656_v45 }
 0x1be   : > { %v1126_v28 = vpop.f32.mrf.mxu1  ;;  %860 = vmatprep.mubr.bf16.mxu1 %v1223_v55 }
 0x1bf   : > { %821 = vmatmul.mubr.bf16.gmra.mxu0 %v666_v27  ;;  %v660_v35 = vmax.f32 %v634_v30, 0.0  ;;  %v645_v39 = vadd.f32 %v1126_v28, %v1032_v58 }
 0x1c0   : > { %v636_v31 = vpop.f32.mrf.mxu1  ;;  %830 = vmatprep.mubr.bf16.mxu0 %v1223_v55 }
 0x1c1   : > { %v637_v33 = vadd.f32 %v1032_v58, %v636_v31  ;;  %v663_v44 = vmax.f32 %v645_v39, 0.0 }
 0x1c3   : > { %v661_v36 = vmax.f32 %v637_v33, 0.0  ;;  %v671_v48 = vpack.c.bf16 %v663_v44, %v662_v46 }
 0x1c5   : > { %v670_v40 = vpack.c.bf16 %v661_v36, %v660_v35 }
 0x1c7   : > { %831 = vmatmul.mubr.bf16.gmra.mxu0 %v667_v37  ;;  %861 = vmatmul.mubr.bf16.gmra.mxu1 %v670_v40 }
 0x1c8   : > { %840 = vmatprep.mubr.bf16.mxu0 %v1223_v55  ;;  %870 = vmatprep.mubr.bf16.mxu1 %v1223_v55 }
 0x1cf   : > { %841 = vmatmul.mubr.bf16.gmra.mxu0 %v668_v47  ;;  %871 = vmatmul.mubr.bf16.gmra.mxu1 %v671_v48 }
 0x26f   : > { %v802_v52 = vpop.f32.mrf.mxu0 }
 0x271   : > { %v804_v53 = vpop.f32.mrf.mxu0 }
 0x273   : > { %v806_v54 = vpop.f32.mrf.mxu0 }
 0x275   : > { %v808_v55 = vpop.f32.mrf.mxu0 }
 0x277   : > { %v812_v56 = vpop.f32.mrf.mxu0 }
 0x278   : > { %v881_v8 = vmax.f32 %v802_v52, %v812_v56 }
 0x279   : > { %v814_v57 = vpop.f32.mrf.mxu0 }
 0x27a   : > { %v902_v11 = vmax.f32 %v804_v53, %v814_v57  ;;  %v1225_v57 = vmov 1966171168  }
 0x27b   : > { %v816_v58 = vpop.f32.mrf.mxu0 }
 0x27c   : > { %v882_v15 = vmax.f32 %v806_v54, %v816_v58  ;;  %v928_v58 = vunpack.c.l.s4 %v1225_v57 }
 0x27d   : > { %v818_v59 = vpop.f32.mrf.mxu0  ;;  %v852_v60 = vpop.f32.mrf.mxu1 }
 0x27e   : > { %v903_v20 = vmax.f32 %v808_v55, %v818_v59 }
 0x27f   : > { %v822_v61 = vpop.f32.mrf.mxu0  ;;  %v854_v62 = vpop.f32.mrf.mxu1 }
 0x280   : > { %v883_v12 = vmax.f32 %v881_v8, %v822_v61 }
 0x281   : > { %v824_v63 = vpop.f32.mrf.mxu0  ;;  %v856_v0 = vpop.f32.mrf.mxu1 }
 0x282   : > { %v904_v16 = vmax.f32 %v902_v11, %v824_v63  ;;  %v929_v63 = vunpack.c.0.s8 %v928_v58 }
 0x283   : > { %v826_v1 = vpop.f32.mrf.mxu0  ;;  %v858_v2 = vpop.f32.mrf.mxu1 }
 0x284   : > { %v884_v21 = vmax.f32 %v882_v15, %v826_v1 }
 0x285   : > { %v828_v3 = vpop.f32.mrf.mxu0 }
 0x286   : > { %v905_v25 = vmax.f32 %v903_v20, %v828_v3 }
 0x287   : > { %v832_v4 = vpop.f32.mrf.mxu0  ;;  %v862_v5 = vpop.f32.mrf.mxu1 }
 0x288   : > { %v885_v17 = vmax.f32 %v883_v12, %v832_v4 }
 0x289   : > { %v834_v6 = vpop.f32.mrf.mxu0  ;;  %v864_v7 = vpop.f32.mrf.mxu1 }
 0x28a   : > { %v906_v22 = vmax.f32 %v904_v16, %v834_v6 }
 0x28b   : > { %v836_v9 = vpop.f32.mrf.mxu0  ;;  %v866_v10 = vpop.f32.mrf.mxu1 }
 0x28c   : > { %v886_v26 = vmax.f32 %v884_v21, %v836_v9 }
 0x28d   : > { %v838_v13 = vpop.f32.mrf.mxu0  ;;  %v868_v14 = vpop.f32.mrf.mxu1 }
 0x28e   : > { %v907_v31 = vmax.f32 %v905_v25, %v838_v13 }
 0x28f   : > { %v842_v18 = vpop.f32.mrf.mxu0  ;;  %v872_v19 = vpop.f32.mrf.mxu1 }
 0x290   : > { %v887_v23 = vmax.f32 %v885_v17, %v842_v18 }
 0x291   : > { %v844_v24 = vpop.f32.mrf.mxu0  ;;  %v874_v29 = vpop.f32.mrf.mxu1 }
 0x292   : > { %v889_v27 = vmax.f32 %v887_v23, %v852_v60  ;;  %v908_v28 = vmax.f32 %v906_v22, %v844_v24 }
 0x293   : > { %v846_v30 = vpop.f32.mrf.mxu0  ;;  %v876_v38 = vpop.f32.mrf.mxu1 }
 0x294   : > { %v910_v32 = vmax.f32 %v908_v28, %v854_v62  ;;  %v888_v33 = vmax.f32 %v886_v26, %v846_v30  ;;  %v891_v35 = vmax.f32 %v889_v27, %v862_v5 }
 0x295   : > { %v848_v34 = vpop.f32.mrf.mxu0  ;;  %v878_v45 = vpop.f32.mrf.mxu1 }
 0x296   : > { %v890_v36 = vmax.f32 %v888_v33, %v856_v0  ;;  %v909_v37 = vmax.f32 %v907_v31, %v848_v34  ;;  %v912_v39 = vmax.f32 %v910_v32, %v864_v7  ;;  %v893_v42 = vmax.f32 %v891_v35, %v872_v19  ;;  %v923_v7 = vld [vmem:[%s1446_s14] sm:$0x3] }
 0x297   : > { %v931_v0 = vshrl.u32 %v283_v49, 7 }
 0x298   : > { %v892_v40 = vmax.f32 %v890_v36, %v866_v10  ;;  %v911_v41 = vmax.f32 %v909_v37, %v858_v2  ;;  %v914_v46 = vmax.f32 %v912_v39, %v874_v29 }
 0x299   : > { %v932_v4 = vsub.s32 %v929_v63, %v931_v0 }
 0x29a   : > { %v894_v43 = vmax.f32 %v892_v40, %v876_v38  ;;  %v913_v44 = vmax.f32 %v911_v41, %v868_v14 }
 0x29c   : > { %v895_v47 = vmax.f32 %v893_v42, %v894_v43  ;;  %v915_v48 = vmax.f32 %v913_v44, %v878_v45 }
 0x29e   : > { %v896_v51 = vrot.slane %v895_v47, 4  ;;  %v916_v52 = vmax.f32 %v914_v46, %v915_v48 }
 0x2a0   : > { %v897_v53 = vmax.f32 %v895_v47, %v896_v51  ;;  %v917_v54 = vrot.slane %v916_v52, 4 }
 0x2a2   : > { %v898_v55 = vrot.slane %v897_v53, 2  ;;  %v918_v56 = vmax.f32 %v916_v52, %v917_v54 }
 0x2a4   : > { %v899_v59 = vmax.f32 %v897_v53, %v898_v55  ;;  %v919_v60 = vrot.slane %v918_v56, 2 }
 0x2a6   : > { %v900_v61 = vrot.slane %v899_v59, 1  ;;  %v920_v62 = vmax.f32 %v918_v56, %v919_v60 }
 0x2a8   : > { %v921_v1 = vrot.slane %v920_v62, 1  ;;  %v901_v2 = vmax.f32 %v899_v59, %v900_v61 }
 0x2aa   : > { %v922_v3 = vmax.f32 %v920_v62, %v921_v1 }
 0x2ac   : > { %v926_v5 = vcombine.low %v901_v2, %v922_v3 }
 0x2ae   : > { %v933_v6 = vrot.slane %v926_v5, %v932_v4 }
 0x2b0   : > { %v940_v8 = vrot.slane %v933_v6, %v932_v4 }
 0x2b2   : > { %v942_v9 = vmax.f32 %v923_v7, %v940_v8 }
 0x2b4   : > { %947 = vst.msk [vmem:[%s1446_s14] sm:$0x3] %vm1449_vm4, %v942_v9 }
 0x2b5 PF: > { %s16_s23 = sadd.s32 1, %s1221_s23   ;;  %s1479_s21 = smov %s1217_s22 }
 0x2b6   : > { %p13_p5 = scmp.ge.s32.totalorder %s16_s23, 4   ;;  %s1480_s22 = smov %s1482_s24 }
 0x2b8   :  { %15 = sbr.rel (!%p13_p5) target bundleno = 2 (0x2), region = 78 }

</bundles_post_ra>
